<compile_context>
chip_gen: v5e
topology: v5e:2x2
jax: 0.10.0
libtpu: 0.0.40
codegen_flags: <defaults>
</compile_context>

<pallas_src>
import math

import jax
import jax.numpy as jnp
from jax.experimental import pallas as pl
from jax.experimental.pallas import tpu as pltpu


# ----------------------------------------------------------------------------
# Fused Pallas kernel: whole flow (all blocks) in one invocation, no grid.
# ----------------------------------------------------------------------------
def make_dnf_kernel(n_blocks, n_hidden, D, H, has_bn, N):
    eps = 1e-5
    # Unbiased variance divides by (N - 1); guard N == 1 (torch would produce
    # nan/inf there anyway) to keep the kernel finite.
    inv_nm1 = 1.0 / max(N - 1, 1)

    def kernel(*refs):
        it = iter(refs)
        x_ref = next(it)       # (D, N)            initial state (feature-major)
        yidx_ref = next(it)    # (C1, N)           [condition, index]
        mask_ref = next(it)    # (n_blocks, D, 1)
        w0y_ref = next(it)     # (n_blocks, 2H, C1)
        w0x_ref = next(it)     # (n_blocks, 2H, D)
        b0_ref = next(it)      # (n_blocks, 2H, 1)
        if n_hidden > 0:
            wh_ref = next(it)  # (n_blocks, n_hidden, 2H, 2H)  block-diagonal
            bh_ref = next(it)  # (n_blocks, n_hidden, 2H, 1)
        wls_ref = next(it)     # (n_blocks, D, H)   s-net last layer
        bls_ref = next(it)     # (n_blocks, D, 1)
        wlt_ref = next(it)     # (n_blocks, D, H)   t-net last layer
        blt_ref = next(it)     # (n_blocks, D, 1)
        if has_bn:
            gamma_ref = next(it)   # (n_blocks, D, 1)   exp(log_gamma), precomputed
            lgsum_ref = next(it)   # (n_blocks, 1, 1)   sum(log_gamma), precomputed
            beta_ref = next(it)    # (n_blocks, D, 1)
        z_ref = next(it)       # (D, N)  output (aliases x input in HBM)
        nld_ref = next(it)     # (1, N)  output, sum(-logdet) per row

        x = x_ref[...]                     # (D, N)
        yidx = yidx_ref[...]               # (C1, N)
        nld = jnp.zeros((1, N), jnp.float32)

        for b in range(n_blocks):          # blocks are serial; fully unrolled
            mask = mask_ref[b]             # (D, 1)
            inv_mask = 1.0 - mask

            # Fused s/t MLP, feature-major: h = [h_s ; h_t] with shape (2H, N).
            # Layer-0 matmul split over [yidx | x*mask] -> no concatenate.
            h = (jnp.dot(w0y_ref[b], yidx, preferred_element_type=jnp.float32)
                 + jnp.dot(w0x_ref[b], x * mask,
                           preferred_element_type=jnp.float32)
                 + b0_ref[b])
            h = jnp.maximum(h, 0.0)
            for i in range(n_hidden):
                h = jnp.maximum(
                    jnp.dot(wh_ref[b, i], h, preferred_element_type=jnp.float32)
                    + bh_ref[b, i], 0.0)

            # Last layer: two small aligned matmuls on the sublane-aligned
            # halves of h (H is a multiple of 8), avoiding sub-tile slicing.
            s = jnp.dot(wls_ref[b], h[:H],
                        preferred_element_type=jnp.float32) + bls_ref[b]
            t = (jnp.dot(wlt_ref[b], h[H:],
                         preferred_element_type=jnp.float32)
                 + blt_ref[b]) * inv_mask

            log_s = jnp.tanh(s) * inv_mask
            x = x * jnp.exp(log_s) + t
            # coupling log-det: reduce over the (small) feature axis -> (1, N)
            nld = nld - jnp.sum(log_s, axis=0, keepdims=True)

            if has_bn:
                # RunningAverageBatchNorm.forward, training mode: full-batch
                # stats over N (lane axis), unbiased variance.
                mean = jnp.mean(x, axis=1, keepdims=True)            # (D, 1)
                diff = x - mean
                var = jnp.sum(diff * diff, axis=1, keepdims=True) * inv_nm1
                inv_std = jax.lax.rsqrt(var + eps)
                x = gamma_ref[b] * (diff * inv_std) + beta_ref[b]
                # BN log-det is row-constant: add its feature-sum as a scalar.
                nld = nld - (lgsum_ref[b]
                             - 0.5 * jnp.sum(jnp.log(var + eps),
                                             axis=0, keepdims=True))

        z_ref[...] = x
        nld_ref[...] = nld

    return kernel


# ----------------------------------------------------------------------------
# Wrapper: one pallas_call for the full flow, feature-major layout.
# ----------------------------------------------------------------------------
def dnf_forward(params, z, condition):
    """DNF.forward, reverse=False: returns (z_out, sum(-delta_logpz, dim=-1))."""
    B, T, D = z.shape
    N = B * T
    # Feature-major state: (D, N) so N sits on the lane axis.
    x2dT = z.reshape(N, D).astype(jnp.float32).T                       # (D, N)

    cond = condition.astype(jnp.float32)
    # index = cumsum(ones)/T along the sequence axis -> (1/T, ..., 1)
    index = jnp.arange(1, T + 1, dtype=jnp.float32) / T
    y_exp = jnp.broadcast_to(cond[:, None, :], (B, T, cond.shape[-1]))
    idx_exp = jnp.broadcast_to(index[None, :, None], (B, T, 1))
    yidxT = jnp.concatenate([y_exp, idx_exp], axis=-1).reshape(N, -1).T  # (C1, N)

    n_blocks = params["mask"].shape[0]
    has_bn = "gamma" in params
    n_hidden = params["wh"].shape[1] if "wh" in params else 0
    H = params["wls"].shape[-1]

    args = [x2dT, yidxT, params["mask"], params["w0y"], params["w0x"],
            params["b0"]]
    if n_hidden > 0:
        args += [params["wh"], params["bh"]]
    args += [params["wls"], params["bls"], params["wlt"], params["blt"]]
    if has_bn:
        args += [params["gamma"], params["lgsum"], params["beta"]]

    out_shape = (jax.ShapeDtypeStruct((D, N), jnp.float32),
                 jax.ShapeDtypeStruct((1, N), jnp.float32))

    vmem_spec = pl.BlockSpec(memory_space=pltpu.MemorySpace.VMEM)
    in_specs = [vmem_spec] * len(args)
    out_specs = (vmem_spec, vmem_spec)

    # Scoped-VMEM budget: resident inputs/outputs + activation slab + headroom,
    # capped at v7x's 64 MiB physical VMEM.
    in_bytes = sum(int(a.size) * 4 for a in args)
    act_bytes = 4 * N * (4 * (2 * H) + 4 * D + 8)
    vmem_limit = int(min(64 << 20, max(32 << 20, 2 * (in_bytes + act_bytes))))

    z2dT, nld = pl.pallas_call(
        make_dnf_kernel(n_blocks, n_hidden, D, H, has_bn, N),
        out_shape=out_shape,
        in_specs=in_specs,
        out_specs=out_specs,
        input_output_aliases={0: 0},   # x (D, N) aliases z output (D, N)
        compiler_params=pltpu.CompilerParams(vmem_limit_bytes=vmem_limit),
    )(*args)

    return z2dT.T.reshape(B, T, D), nld.reshape(B, T)


# ----------------------------------------------------------------------------
# Deterministic parameter init (mirrors module __init__) + packing for kernel
# ----------------------------------------------------------------------------
def _init_linear(key, fan_in, fan_out):
    k1, k2 = jax.random.split(key)
    bound = 1.0 / math.sqrt(fan_in)
    W = jax.random.uniform(k1, (fan_in, fan_out), jnp.float32, -bound, bound)
    b = jax.random.uniform(k2, (1, fan_out), jnp.float32, -bound, bound)
    return W, b


def init_dnf(key, n_blocks, input_size, hidden_size, n_hidden,
             cond_label_size, batch_norm=True):
    """Per-block raw parameters, same structure as the PyTorch module."""
    D, H = input_size, hidden_size
    d_in = D + 1 + cond_label_size
    dims = [d_in] + [H] * (n_hidden + 1) + [D]

    raw_blocks = []
    mask = (jnp.arange(D) % 2).astype(jnp.float32)
    for _ in range(n_blocks):
        s_w, s_b = [], []
        for i in range(len(dims) - 1):
            key, k = jax.random.split(key)
            W, b = _init_linear(k, dims[i], dims[i + 1])
            s_w.append(W)
            s_b.append(b)
        # t_net = copy.deepcopy(s_net) -> identical initial weights
        t_w = [jnp.array(W) for W in s_w]
        t_b = [jnp.array(b) for b in s_b]
        blk = {"mask": mask, "s_w": s_w, "s_b": s_b, "t_w": t_w, "t_b": t_b}
        if batch_norm:
            blk["log_gamma"] = jnp.zeros((D,), jnp.float32)
            blk["beta"] = jnp.zeros((D,), jnp.float32)
        raw_blocks.append(blk)
        mask = 1.0 - mask
    return raw_blocks


def pack_params(raw_blocks, cond_label_size):
    """Stack per-block params, transpose to feature-major, fuse s/t nets."""
    C1 = cond_label_size + 1
    n_lin = len(raw_blocks[0]["s_w"])
    n_hidden = n_lin - 2
    D = raw_blocks[0]["s_w"][-1].shape[1]

    mask_l, w0y_l, w0x_l, b0_l, wh_l, bh_l = [], [], [], [], [], []
    wls_l, bls_l, wlt_l, blt_l = [], [], [], []
    gm_l, lgs_l, be_l = [], [], []

    for blk in raw_blocks:
        s_w, s_b, t_w, t_b = blk["s_w"], blk["s_b"], blk["t_w"], blk["t_b"]
        # Layer 0: split rows for [yidx | x*mask], transpose to (out, in),
        # fuse s/t along the output axis.
        w0y_l.append(jnp.concatenate([s_w[0][:C1].T, t_w[0][:C1].T], axis=0))
        w0x_l.append(jnp.concatenate([s_w[0][C1:].T, t_w[0][C1:].T], axis=0))
        b0_l.append(jnp.concatenate([s_b[0].T, t_b[0].T], axis=0))
        # Hidden layers: block-diagonal fused (2H, 2H).
        whs, bhs = [], []
        for i in range(1, 1 + n_hidden):
            sW, tW = s_w[i].T, t_w[i].T
            top = jnp.concatenate([sW, jnp.zeros_like(sW)], axis=1)
            bot = jnp.concatenate([jnp.zeros_like(tW), tW], axis=1)
            whs.append(jnp.concatenate([top, bot], axis=0))
            bhs.append(jnp.concatenate([s_b[i].T, t_b[i].T], axis=0))
        if n_hidden > 0:
            wh_l.append(jnp.stack(whs))
            bh_l.append(jnp.stack(bhs))
        # Last layer: kept separate (s, t) for aligned (D, H) matmuls.
        wls_l.append(s_w[-1].T)
        bls_l.append(s_b[-1].T)
        wlt_l.append(t_w[-1].T)
        blt_l.append(t_b[-1].T)
        mask_l.append(blk["mask"].reshape(D, 1))
        if "log_gamma" in blk:
            lg = blk["log_gamma"].reshape(D, 1)
            gm_l.append(jnp.exp(lg))
            lgs_l.append(jnp.sum(lg).reshape(1, 1))
            be_l.append(blk["beta"].reshape(D, 1))

    params = {
        "mask": jnp.stack(mask_l),
        "w0y": jnp.stack(w0y_l), "w0x": jnp.stack(w0x_l), "b0": jnp.stack(b0_l),
        "wls": jnp.stack(wls_l), "bls": jnp.stack(bls_l),
        "wlt": jnp.stack(wlt_l), "blt": jnp.stack(blt_l),
    }
    if n_hidden > 0:
        params["wh"] = jnp.stack(wh_l)
        params["bh"] = jnp.stack(bh_l)
    if gm_l:
        params["gamma"] = jnp.stack(gm_l)
        params["lgsum"] = jnp.stack(lgs_l)
        params["beta"] = jnp.stack(be_l)
    return params


# ----------------------------------------------------------------------------
# Plain-JAX reference (unfused, mirrors PyTorch forward) for validation.
# ----------------------------------------------------------------------------
def dnf_forward_ref(raw_blocks, z, condition):
    B, T, D = z.shape
    N = B * T
    x = z.reshape(N, D).astype(jnp.float32)
    index = jnp.arange(1, T + 1, dtype=jnp.float32) / T
    y_exp = jnp.broadcast_to(condition[:, None, :], (B, T, condition.shape[-1]))
    idx_exp = jnp.broadcast_to(index[None, :, None], (B, T, 1))
    yidx = jnp.concatenate([y_exp, idx_exp], axis=-1).reshape(N, -1)

    sum_ld = jnp.zeros((N, D), jnp.float32)
    for blk in raw_blocks:
        mask = blk["mask"]
        net_in = jnp.concatenate([yidx, x * mask], axis=-1)

        def mlp(ws, bs):
            h = net_in
            for i in range(len(ws)):
                h = h @ ws[i] + bs[i]
                if i < len(ws) - 1:
                    h = jnp.maximum(h, 0.0)
            return h

        s = mlp(blk["s_w"], blk["s_b"])
        t = mlp(blk["t_w"], blk["t_b"]) * (1.0 - mask)
        log_s = jnp.tanh(s) * (1.0 - mask)
        x = x * jnp.exp(log_s) + t
        sum_ld = sum_ld + log_s
        if "log_gamma" in blk:
            mean = jnp.mean(x, axis=0, keepdims=True)
            var = jnp.sum((x - mean) ** 2, axis=0, keepdims=True) / (N - 1)
            x_hat = (x - mean) / jnp.sqrt(var + 1e-5)
            x = jnp.exp(blk["log_gamma"]) * x_hat + blk["beta"]
            sum_ld = sum_ld + (blk["log_gamma"] - 0.5 * jnp.log(var + 1e-5))
    return x.reshape(B, T, D), jnp.sum(-sum_ld, axis=-1).reshape(B, T)


# ----------------------------------------------------------------------------
if __name__ == "__main__":
    # Small shapes consistent with the module's forward.
    n_blocks = 2
    input_size = 4        # D
    hidden_size = 32
    n_hidden = 1
    cond_label_size = 6
    B, T = 2, 8           # z: (B, T, D), condition: (B, cond_label_size)

    key = jax.random.PRNGKey(0)
    k_params, k_z, k_c = jax.random.split(key, 3)

    raw_blocks = init_dnf(k_params, n_blocks, input_size, hidden_size, n_hidden,
                          cond_label_size, batch_norm=True)
    params = pack_params(raw_blocks, cond_label_size)

    z = jax.random.normal(k_z, (B, T, input_size), jnp.float32)
    condition = jax.random.normal(k_c, (B, cond_label_size), jnp.float32)

    dnf_jit = jax.jit(dnf_forward)
    z_out, neg_logdet = dnf_jit(params, z, condition)
    jax.block_until_ready((z_out, neg_logdet))

    assert z_out.shape == (B, T, input_size)
    assert neg_logdet.shape == (B, T)
    assert bool(jnp.all(jnp.isfinite(z_out))) and bool(jnp.all(jnp.isfinite(neg_logdet)))

    # Validate against the unfused plain-JAX reference (loose tol: MXU precision).
    z_ref, nld_ref = dnf_forward_ref(raw_blocks, z, condition)
    assert bool(jnp.allclose(z_out, z_ref, rtol=5e-2, atol=5e-2)), "z_out mismatch"
    assert bool(jnp.allclose(neg_logdet, nld_ref, rtol=5e-2, atol=5e-2)), "logdet mismatch"

    print("KERNEL_OK")
</pallas_src>

<mosaic_0001>
module attributes {stable_mosaic.version = 11 : i64} {
  func.func @kernel(%arg0: memref<4x16xf32, #tpu.memory_space<vmem>>, %arg1: memref<7x16xf32, #tpu.memory_space<vmem>>, %arg2: memref<2x4x1xf32, #tpu.memory_space<vmem>>, %arg3: memref<2x64x7xf32, #tpu.memory_space<vmem>>, %arg4: memref<2x64x4xf32, #tpu.memory_space<vmem>>, %arg5: memref<2x64x1xf32, #tpu.memory_space<vmem>>, %arg6: memref<2x1x64x64xf32, #tpu.memory_space<vmem>>, %arg7: memref<2x1x64x1xf32, #tpu.memory_space<vmem>>, %arg8: memref<2x4x32xf32, #tpu.memory_space<vmem>>, %arg9: memref<2x4x1xf32, #tpu.memory_space<vmem>>, %arg10: memref<2x4x32xf32, #tpu.memory_space<vmem>>, %arg11: memref<2x4x1xf32, #tpu.memory_space<vmem>>, %arg12: memref<2x4x1xf32, #tpu.memory_space<vmem>>, %arg13: memref<2x1x1xf32, #tpu.memory_space<vmem>>, %arg14: memref<2x4x1xf32, #tpu.memory_space<vmem>>, %arg15: memref<4x16xf32, #tpu.memory_space<vmem>>, %arg16: memref<1x16xf32, #tpu.memory_space<vmem>>) attributes {dimension_semantics = [], scalar_prefetch = 0 : i64, scratch_operands = 0 : i64, tpu.core_type = #tpu.core_type<tc>} {
    %c0 = arith.constant 0 : index
    %c0_0 = arith.constant 0 : index
    %0 = vector.load %arg0[%c0, %c0_0] : memref<4x16xf32, #tpu.memory_space<vmem>>, vector<4x16xf32>
    %c0_1 = arith.constant 0 : index
    %c0_2 = arith.constant 0 : index
    %1 = vector.load %arg1[%c0_1, %c0_2] : memref<7x16xf32, #tpu.memory_space<vmem>>, vector<7x16xf32>
    %cst = arith.constant 0.000000e+00 : f32
    %2 = vector.broadcast %cst : f32 to vector<1x16xf32>
    %c0_3 = arith.constant 0 : index
    %c0_4 = arith.constant 0 : index
    %c0_5 = arith.constant 0 : index
    %3 = vector.load %arg2[%c0_3, %c0_4, %c0_5] : memref<2x4x1xf32, #tpu.memory_space<vmem>>, vector<1x4x1xf32>
    %4 = vector.shape_cast %3 : vector<1x4x1xf32> to vector<4x1xf32>
    %cst_6 = arith.constant 1.000000e+00 : f32
    %5 = vector.broadcast %cst_6 : f32 to vector<4x1xf32>
    %6 = arith.subf %5, %4 : vector<4x1xf32>
    %c0_7 = arith.constant 0 : index
    %c0_8 = arith.constant 0 : index
    %c0_9 = arith.constant 0 : index
    %7 = vector.load %arg3[%c0_7, %c0_8, %c0_9] : memref<2x64x7xf32, #tpu.memory_space<vmem>>, vector<1x64x7xf32>
    %8 = vector.shape_cast %7 : vector<1x64x7xf32> to vector<64x7xf32>
    %cst_10 = arith.constant dense<0.000000e+00> : vector<64x16xf32>
    %9 = tpu.matmul %8, %1, %cst_10 {dimension_numbers = #tpu.dot_dimension_numbers<[1], [0], [0], [1], [0, 0, 1, 1], [], []>} : vector<64x7xf32>, vector<7x16xf32>, vector<64x16xf32> -> vector<64x16xf32>
    %c0_11 = arith.constant 0 : index
    %c0_12 = arith.constant 0 : index
    %c0_13 = arith.constant 0 : index
    %10 = vector.load %arg4[%c0_11, %c0_12, %c0_13] : memref<2x64x4xf32, #tpu.memory_space<vmem>>, vector<1x64x4xf32>
    %11 = vector.shape_cast %10 : vector<1x64x4xf32> to vector<64x4xf32>
    %12 = vector.broadcast %4 : vector<4x1xf32> to vector<4x16xf32>
    %13 = arith.mulf %0, %12 : vector<4x16xf32>
    %cst_14 = arith.constant dense<0.000000e+00> : vector<64x16xf32>
    %14 = tpu.matmul %11, %13, %cst_14 {dimension_numbers = #tpu.dot_dimension_numbers<[1], [0], [0], [1], [0, 0, 1, 1], [], []>} : vector<64x4xf32>, vector<4x16xf32>, vector<64x16xf32> -> vector<64x16xf32>
    %15 = arith.addf %9, %14 : vector<64x16xf32>
    %c0_15 = arith.constant 0 : index
    %c0_16 = arith.constant 0 : index
    %c0_17 = arith.constant 0 : index
    %16 = vector.load %arg5[%c0_15, %c0_16, %c0_17] : memref<2x64x1xf32, #tpu.memory_space<vmem>>, vector<1x64x1xf32>
    %17 = vector.shape_cast %16 : vector<1x64x1xf32> to vector<64x1xf32>
    %18 = vector.broadcast %17 : vector<64x1xf32> to vector<64x16xf32>
    %19 = arith.addf %15, %18 : vector<64x16xf32>
    %cst_18 = arith.constant 0.000000e+00 : f32
    %20 = vector.broadcast %cst_18 : f32 to vector<64x16xf32>
    %21 = arith.maximumf %19, %20 : vector<64x16xf32>
    %c0_19 = arith.constant 0 : index
    %c0_20 = arith.constant 0 : index
    %c0_21 = arith.constant 0 : index
    %c0_22 = arith.constant 0 : index
    %22 = vector.load %arg6[%c0_19, %c0_20, %c0_21, %c0_22] : memref<2x1x64x64xf32, #tpu.memory_space<vmem>>, vector<1x1x64x64xf32>
    %23 = vector.shape_cast %22 : vector<1x1x64x64xf32> to vector<64x64xf32>
    %cst_23 = arith.constant dense<0.000000e+00> : vector<64x16xf32>
    %24 = tpu.matmul %23, %21, %cst_23 {dimension_numbers = #tpu.dot_dimension_numbers<[1], [0], [0], [1], [0, 0, 1, 1], [], []>} : vector<64x64xf32>, vector<64x16xf32>, vector<64x16xf32> -> vector<64x16xf32>
    %c0_24 = arith.constant 0 : index
    %c0_25 = arith.constant 0 : index
    %c0_26 = arith.constant 0 : index
    %c0_27 = arith.constant 0 : index
    %25 = vector.load %arg7[%c0_24, %c0_25, %c0_26, %c0_27] : memref<2x1x64x1xf32, #tpu.memory_space<vmem>>, vector<1x1x64x1xf32>
    %26 = vector.shape_cast %25 : vector<1x1x64x1xf32> to vector<64x1xf32>
    %27 = vector.broadcast %26 : vector<64x1xf32> to vector<64x16xf32>
    %28 = arith.addf %24, %27 : vector<64x16xf32>
    %cst_28 = arith.constant 0.000000e+00 : f32
    %29 = vector.broadcast %cst_28 : f32 to vector<64x16xf32>
    %30 = arith.maximumf %28, %29 : vector<64x16xf32>
    %c0_29 = arith.constant 0 : index
    %c0_30 = arith.constant 0 : index
    %c0_31 = arith.constant 0 : index
    %31 = vector.load %arg8[%c0_29, %c0_30, %c0_31] : memref<2x4x32xf32, #tpu.memory_space<vmem>>, vector<1x4x32xf32>
    %32 = vector.shape_cast %31 : vector<1x4x32xf32> to vector<4x32xf32>
    %33 = vector.extract_strided_slice %30 {offsets = [0, 0], sizes = [32, 16], strides = [1, 1]} : vector<64x16xf32> to vector<32x16xf32>
    %cst_32 = arith.constant dense<0.000000e+00> : vector<4x16xf32>
    %34 = tpu.matmul %32, %33, %cst_32 {dimension_numbers = #tpu.dot_dimension_numbers<[1], [0], [0], [1], [0, 0, 1, 1], [], []>} : vector<4x32xf32>, vector<32x16xf32>, vector<4x16xf32> -> vector<4x16xf32>
    %c0_33 = arith.constant 0 : index
    %c0_34 = arith.constant 0 : index
    %c0_35 = arith.constant 0 : index
    %35 = vector.load %arg9[%c0_33, %c0_34, %c0_35] : memref<2x4x1xf32, #tpu.memory_space<vmem>>, vector<1x4x1xf32>
    %36 = vector.shape_cast %35 : vector<1x4x1xf32> to vector<4x1xf32>
    %37 = vector.broadcast %36 : vector<4x1xf32> to vector<4x16xf32>
    %38 = arith.addf %34, %37 : vector<4x16xf32>
    %c0_36 = arith.constant 0 : index
    %c0_37 = arith.constant 0 : index
    %c0_38 = arith.constant 0 : index
    %39 = vector.load %arg10[%c0_36, %c0_37, %c0_38] : memref<2x4x32xf32, #tpu.memory_space<vmem>>, vector<1x4x32xf32>
    %40 = vector.shape_cast %39 : vector<1x4x32xf32> to vector<4x32xf32>
    %41 = vector.extract_strided_slice %30 {offsets = [32, 0], sizes = [32, 16], strides = [1, 1]} : vector<64x16xf32> to vector<32x16xf32>
    %cst_39 = arith.constant dense<0.000000e+00> : vector<4x16xf32>
    %42 = tpu.matmul %40, %41, %cst_39 {dimension_numbers = #tpu.dot_dimension_numbers<[1], [0], [0], [1], [0, 0, 1, 1], [], []>} : vector<4x32xf32>, vector<32x16xf32>, vector<4x16xf32> -> vector<4x16xf32>
    %c0_40 = arith.constant 0 : index
    %c0_41 = arith.constant 0 : index
    %c0_42 = arith.constant 0 : index
    %43 = vector.load %arg11[%c0_40, %c0_41, %c0_42] : memref<2x4x1xf32, #tpu.memory_space<vmem>>, vector<1x4x1xf32>
    %44 = vector.shape_cast %43 : vector<1x4x1xf32> to vector<4x1xf32>
    %45 = vector.broadcast %44 : vector<4x1xf32> to vector<4x16xf32>
    %46 = arith.addf %42, %45 : vector<4x16xf32>
    %47 = vector.broadcast %6 : vector<4x1xf32> to vector<4x16xf32>
    %48 = arith.mulf %46, %47 : vector<4x16xf32>
    %49 = math.tanh %38 : vector<4x16xf32>
    %50 = vector.broadcast %6 : vector<4x1xf32> to vector<4x16xf32>
    %51 = arith.mulf %49, %50 : vector<4x16xf32>
    %52 = math.exp %51 : vector<4x16xf32>
    %53 = arith.mulf %0, %52 : vector<4x16xf32>
    %54 = arith.addf %53, %48 : vector<4x16xf32>
    %cst_43 = arith.constant dense<0.000000e+00> : vector<16xf32>
    %55 = vector.multi_reduction <add>, %51, %cst_43 [0] : vector<4x16xf32> to vector<16xf32>
    %56 = vector.shape_cast %55 : vector<16xf32> to vector<1x16xf32>
    %57 = arith.subf %2, %56 : vector<1x16xf32>
    %cst_44 = arith.constant dense<0.000000e+00> : vector<4xf32>
    %58 = vector.multi_reduction <add>, %54, %cst_44 [1] : vector<4x16xf32> to vector<4xf32>
    %59 = vector.shape_cast %58 : vector<4xf32> to vector<4x1xf32>
    %cst_45 = arith.constant 1.600000e+01 : f32
    %60 = vector.broadcast %cst_45 : f32 to vector<4x1xf32>
    %61 = arith.divf %59, %60 : vector<4x1xf32>
    %62 = vector.broadcast %61 : vector<4x1xf32> to vector<4x16xf32>
    %63 = arith.subf %54, %62 : vector<4x16xf32>
    %64 = arith.mulf %63, %63 : vector<4x16xf32>
    %cst_46 = arith.constant dense<0.000000e+00> : vector<4xf32>
    %65 = vector.multi_reduction <add>, %64, %cst_46 [1] : vector<4x16xf32> to vector<4xf32>
    %66 = vector.shape_cast %65 : vector<4xf32> to vector<4x1xf32>
    %cst_47 = arith.constant 0.0666666701 : f32
    %67 = vector.broadcast %cst_47 : f32 to vector<4x1xf32>
    %68 = arith.mulf %66, %67 : vector<4x1xf32>
    %cst_48 = arith.constant 9.99999974E-6 : f32
    %69 = vector.broadcast %cst_48 : f32 to vector<4x1xf32>
    %70 = arith.addf %68, %69 : vector<4x1xf32>
    %71 = math.rsqrt %70 : vector<4x1xf32>
    %c0_49 = arith.constant 0 : index
    %c0_50 = arith.constant 0 : index
    %c0_51 = arith.constant 0 : index
    %72 = vector.load %arg12[%c0_49, %c0_50, %c0_51] : memref<2x4x1xf32, #tpu.memory_space<vmem>>, vector<1x4x1xf32>
    %73 = vector.shape_cast %72 : vector<1x4x1xf32> to vector<4x1xf32>
    %74 = vector.broadcast %71 : vector<4x1xf32> to vector<4x16xf32>
    %75 = arith.mulf %63, %74 : vector<4x16xf32>
    %76 = vector.broadcast %73 : vector<4x1xf32> to vector<4x16xf32>
    %77 = arith.mulf %76, %75 : vector<4x16xf32>
    %c0_52 = arith.constant 0 : index
    %c0_53 = arith.constant 0 : index
    %c0_54 = arith.constant 0 : index
    %78 = vector.load %arg14[%c0_52, %c0_53, %c0_54] : memref<2x4x1xf32, #tpu.memory_space<vmem>>, vector<1x4x1xf32>
    %79 = vector.shape_cast %78 : vector<1x4x1xf32> to vector<4x1xf32>
    %80 = vector.broadcast %79 : vector<4x1xf32> to vector<4x16xf32>
    %81 = arith.addf %77, %80 : vector<4x16xf32>
    %c0_55 = arith.constant 0 : index
    %c0_56 = arith.constant 0 : index
    %c0_57 = arith.constant 0 : index
    %82 = vector.load %arg13[%c0_55, %c0_56, %c0_57] : memref<2x1x1xf32, #tpu.memory_space<vmem>>, vector<1x1x1xf32>
    %83 = vector.shape_cast %82 : vector<1x1x1xf32> to vector<1x1xf32>
    %cst_58 = arith.constant 9.99999974E-6 : f32
    %84 = vector.broadcast %cst_58 : f32 to vector<4x1xf32>
    %85 = arith.addf %68, %84 : vector<4x1xf32>
    %86 = math.log %85 : vector<4x1xf32>
    %cst_59 = arith.constant dense<0.000000e+00> : vector<1xf32>
    %87 = vector.multi_reduction <add>, %86, %cst_59 [0] : vector<4x1xf32> to vector<1xf32>
    %88 = vector.shape_cast %87 : vector<1xf32> to vector<1x1xf32>
    %cst_60 = arith.constant 5.000000e-01 : f32
    %89 = vector.broadcast %cst_60 : f32 to vector<1x1xf32>
    %90 = arith.mulf %89, %88 : vector<1x1xf32>
    %91 = arith.subf %83, %90 : vector<1x1xf32>
    %92 = vector.broadcast %91 : vector<1x1xf32> to vector<1x16xf32>
    %93 = arith.subf %57, %92 : vector<1x16xf32>
    %c1 = arith.constant 1 : index
    %c0_61 = arith.constant 0 : index
    %c0_62 = arith.constant 0 : index
    %94 = vector.load %arg2[%c1, %c0_61, %c0_62] : memref<2x4x1xf32, #tpu.memory_space<vmem>>, vector<1x4x1xf32>
    %95 = vector.shape_cast %94 : vector<1x4x1xf32> to vector<4x1xf32>
    %cst_63 = arith.constant 1.000000e+00 : f32
    %96 = vector.broadcast %cst_63 : f32 to vector<4x1xf32>
    %97 = arith.subf %96, %95 : vector<4x1xf32>
    %c1_64 = arith.constant 1 : index
    %c0_65 = arith.constant 0 : index
    %c0_66 = arith.constant 0 : index
    %98 = vector.load %arg3[%c1_64, %c0_65, %c0_66] : memref<2x64x7xf32, #tpu.memory_space<vmem>>, vector<1x64x7xf32>
    %99 = vector.shape_cast %98 : vector<1x64x7xf32> to vector<64x7xf32>
    %cst_67 = arith.constant dense<0.000000e+00> : vector<64x16xf32>
    %100 = tpu.matmul %99, %1, %cst_67 {dimension_numbers = #tpu.dot_dimension_numbers<[1], [0], [0], [1], [0, 0, 1, 1], [], []>} : vector<64x7xf32>, vector<7x16xf32>, vector<64x16xf32> -> vector<64x16xf32>
    %c1_68 = arith.constant 1 : index
    %c0_69 = arith.constant 0 : index
    %c0_70 = arith.constant 0 : index
    %101 = vector.load %arg4[%c1_68, %c0_69, %c0_70] : memref<2x64x4xf32, #tpu.memory_space<vmem>>, vector<1x64x4xf32>
    %102 = vector.shape_cast %101 : vector<1x64x4xf32> to vector<64x4xf32>
    %103 = vector.broadcast %95 : vector<4x1xf32> to vector<4x16xf32>
    %104 = arith.mulf %81, %103 : vector<4x16xf32>
    %cst_71 = arith.constant dense<0.000000e+00> : vector<64x16xf32>
    %105 = tpu.matmul %102, %104, %cst_71 {dimension_numbers = #tpu.dot_dimension_numbers<[1], [0], [0], [1], [0, 0, 1, 1], [], []>} : vector<64x4xf32>, vector<4x16xf32>, vector<64x16xf32> -> vector<64x16xf32>
    %106 = arith.addf %100, %105 : vector<64x16xf32>
    %c1_72 = arith.constant 1 : index
    %c0_73 = arith.constant 0 : index
    %c0_74 = arith.constant 0 : index
    %107 = vector.load %arg5[%c1_72, %c0_73, %c0_74] : memref<2x64x1xf32, #tpu.memory_space<vmem>>, vector<1x64x1xf32>
    %108 = vector.shape_cast %107 : vector<1x64x1xf32> to vector<64x1xf32>
    %109 = vector.broadcast %108 : vector<64x1xf32> to vector<64x16xf32>
    %110 = arith.addf %106, %109 : vector<64x16xf32>
    %cst_75 = arith.constant 0.000000e+00 : f32
    %111 = vector.broadcast %cst_75 : f32 to vector<64x16xf32>
    %112 = arith.maximumf %110, %111 : vector<64x16xf32>
    %c1_76 = arith.constant 1 : index
    %c0_77 = arith.constant 0 : index
    %c0_78 = arith.constant 0 : index
    %c0_79 = arith.constant 0 : index
    %113 = vector.load %arg6[%c1_76, %c0_77, %c0_78, %c0_79] : memref<2x1x64x64xf32, #tpu.memory_space<vmem>>, vector<1x1x64x64xf32>
    %114 = vector.shape_cast %113 : vector<1x1x64x64xf32> to vector<64x64xf32>
    %cst_80 = arith.constant dense<0.000000e+00> : vector<64x16xf32>
    %115 = tpu.matmul %114, %112, %cst_80 {dimension_numbers = #tpu.dot_dimension_numbers<[1], [0], [0], [1], [0, 0, 1, 1], [], []>} : vector<64x64xf32>, vector<64x16xf32>, vector<64x16xf32> -> vector<64x16xf32>
    %c1_81 = arith.constant 1 : index
    %c0_82 = arith.constant 0 : index
    %c0_83 = arith.constant 0 : index
    %c0_84 = arith.constant 0 : index
    %116 = vector.load %arg7[%c1_81, %c0_82, %c0_83, %c0_84] : memref<2x1x64x1xf32, #tpu.memory_space<vmem>>, vector<1x1x64x1xf32>
    %117 = vector.shape_cast %116 : vector<1x1x64x1xf32> to vector<64x1xf32>
    %118 = vector.broadcast %117 : vector<64x1xf32> to vector<64x16xf32>
    %119 = arith.addf %115, %118 : vector<64x16xf32>
    %cst_85 = arith.constant 0.000000e+00 : f32
    %120 = vector.broadcast %cst_85 : f32 to vector<64x16xf32>
    %121 = arith.maximumf %119, %120 : vector<64x16xf32>
    %c1_86 = arith.constant 1 : index
    %c0_87 = arith.constant 0 : index
    %c0_88 = arith.constant 0 : index
    %122 = vector.load %arg8[%c1_86, %c0_87, %c0_88] : memref<2x4x32xf32, #tpu.memory_space<vmem>>, vector<1x4x32xf32>
    %123 = vector.shape_cast %122 : vector<1x4x32xf32> to vector<4x32xf32>
    %124 = vector.extract_strided_slice %121 {offsets = [0, 0], sizes = [32, 16], strides = [1, 1]} : vector<64x16xf32> to vector<32x16xf32>
    %cst_89 = arith.constant dense<0.000000e+00> : vector<4x16xf32>
    %125 = tpu.matmul %123, %124, %cst_89 {dimension_numbers = #tpu.dot_dimension_numbers<[1], [0], [0], [1], [0, 0, 1, 1], [], []>} : vector<4x32xf32>, vector<32x16xf32>, vector<4x16xf32> -> vector<4x16xf32>
    %c1_90 = arith.constant 1 : index
    %c0_91 = arith.constant 0 : index
    %c0_92 = arith.constant 0 : index
    %126 = vector.load %arg9[%c1_90, %c0_91, %c0_92] : memref<2x4x1xf32, #tpu.memory_space<vmem>>, vector<1x4x1xf32>
    %127 = vector.shape_cast %126 : vector<1x4x1xf32> to vector<4x1xf32>
    %128 = vector.broadcast %127 : vector<4x1xf32> to vector<4x16xf32>
    %129 = arith.addf %125, %128 : vector<4x16xf32>
    %c1_93 = arith.constant 1 : index
    %c0_94 = arith.constant 0 : index
    %c0_95 = arith.constant 0 : index
    %130 = vector.load %arg10[%c1_93, %c0_94, %c0_95] : memref<2x4x32xf32, #tpu.memory_space<vmem>>, vector<1x4x32xf32>
    %131 = vector.shape_cast %130 : vector<1x4x32xf32> to vector<4x32xf32>
    %132 = vector.extract_strided_slice %121 {offsets = [32, 0], sizes = [32, 16], strides = [1, 1]} : vector<64x16xf32> to vector<32x16xf32>
    %cst_96 = arith.constant dense<0.000000e+00> : vector<4x16xf32>
    %133 = tpu.matmul %131, %132, %cst_96 {dimension_numbers = #tpu.dot_dimension_numbers<[1], [0], [0], [1], [0, 0, 1, 1], [], []>} : vector<4x32xf32>, vector<32x16xf32>, vector<4x16xf32> -> vector<4x16xf32>
    %c1_97 = arith.constant 1 : index
    %c0_98 = arith.constant 0 : index
    %c0_99 = arith.constant 0 : index
    %134 = vector.load %arg11[%c1_97, %c0_98, %c0_99] : memref<2x4x1xf32, #tpu.memory_space<vmem>>, vector<1x4x1xf32>
    %135 = vector.shape_cast %134 : vector<1x4x1xf32> to vector<4x1xf32>
    %136 = vector.broadcast %135 : vector<4x1xf32> to vector<4x16xf32>
    %137 = arith.addf %133, %136 : vector<4x16xf32>
    %138 = vector.broadcast %97 : vector<4x1xf32> to vector<4x16xf32>
    %139 = arith.mulf %137, %138 : vector<4x16xf32>
    %140 = math.tanh %129 : vector<4x16xf32>
    %141 = vector.broadcast %97 : vector<4x1xf32> to vector<4x16xf32>
    %142 = arith.mulf %140, %141 : vector<4x16xf32>
    %143 = math.exp %142 : vector<4x16xf32>
    %144 = arith.mulf %81, %143 : vector<4x16xf32>
    %145 = arith.addf %144, %139 : vector<4x16xf32>
    %cst_100 = arith.constant dense<0.000000e+00> : vector<16xf32>
    %146 = vector.multi_reduction <add>, %142, %cst_100 [0] : vector<4x16xf32> to vector<16xf32>
    %147 = vector.shape_cast %146 : vector<16xf32> to vector<1x16xf32>
    %148 = arith.subf %93, %147 : vector<1x16xf32>
    %cst_101 = arith.constant dense<0.000000e+00> : vector<4xf32>
    %149 = vector.multi_reduction <add>, %145, %cst_101 [1] : vector<4x16xf32> to vector<4xf32>
    %150 = vector.shape_cast %149 : vector<4xf32> to vector<4x1xf32>
    %cst_102 = arith.constant 1.600000e+01 : f32
    %151 = vector.broadcast %cst_102 : f32 to vector<4x1xf32>
    %152 = arith.divf %150, %151 : vector<4x1xf32>
    %153 = vector.broadcast %152 : vector<4x1xf32> to vector<4x16xf32>
    %154 = arith.subf %145, %153 : vector<4x16xf32>
    %155 = arith.mulf %154, %154 : vector<4x16xf32>
    %cst_103 = arith.constant dense<0.000000e+00> : vector<4xf32>
    %156 = vector.multi_reduction <add>, %155, %cst_103 [1] : vector<4x16xf32> to vector<4xf32>
    %157 = vector.shape_cast %156 : vector<4xf32> to vector<4x1xf32>
    %cst_104 = arith.constant 0.0666666701 : f32
    %158 = vector.broadcast %cst_104 : f32 to vector<4x1xf32>
    %159 = arith.mulf %157, %158 : vector<4x1xf32>
    %cst_105 = arith.constant 9.99999974E-6 : f32
    %160 = vector.broadcast %cst_105 : f32 to vector<4x1xf32>
    %161 = arith.addf %159, %160 : vector<4x1xf32>
    %162 = math.rsqrt %161 : vector<4x1xf32>
    %c1_106 = arith.constant 1 : index
    %c0_107 = arith.constant 0 : index
    %c0_108 = arith.constant 0 : index
    %163 = vector.load %arg12[%c1_106, %c0_107, %c0_108] : memref<2x4x1xf32, #tpu.memory_space<vmem>>, vector<1x4x1xf32>
    %164 = vector.shape_cast %163 : vector<1x4x1xf32> to vector<4x1xf32>
    %165 = vector.broadcast %162 : vector<4x1xf32> to vector<4x16xf32>
    %166 = arith.mulf %154, %165 : vector<4x16xf32>
    %167 = vector.broadcast %164 : vector<4x1xf32> to vector<4x16xf32>
    %168 = arith.mulf %167, %166 : vector<4x16xf32>
    %c1_109 = arith.constant 1 : index
    %c0_110 = arith.constant 0 : index
    %c0_111 = arith.constant 0 : index
    %169 = vector.load %arg14[%c1_109, %c0_110, %c0_111] : memref<2x4x1xf32, #tpu.memory_space<vmem>>, vector<1x4x1xf32>
    %170 = vector.shape_cast %169 : vector<1x4x1xf32> to vector<4x1xf32>
    %171 = vector.broadcast %170 : vector<4x1xf32> to vector<4x16xf32>
    %172 = arith.addf %168, %171 : vector<4x16xf32>
    %c1_112 = arith.constant 1 : index
    %c0_113 = arith.constant 0 : index
    %c0_114 = arith.constant 0 : index
    %173 = vector.load %arg13[%c1_112, %c0_113, %c0_114] : memref<2x1x1xf32, #tpu.memory_space<vmem>>, vector<1x1x1xf32>
    %174 = vector.shape_cast %173 : vector<1x1x1xf32> to vector<1x1xf32>
    %cst_115 = arith.constant 9.99999974E-6 : f32
    %175 = vector.broadcast %cst_115 : f32 to vector<4x1xf32>
    %176 = arith.addf %159, %175 : vector<4x1xf32>
    %177 = math.log %176 : vector<4x1xf32>
    %cst_116 = arith.constant dense<0.000000e+00> : vector<1xf32>
    %178 = vector.multi_reduction <add>, %177, %cst_116 [0] : vector<4x1xf32> to vector<1xf32>
    %179 = vector.shape_cast %178 : vector<1xf32> to vector<1x1xf32>
    %cst_117 = arith.constant 5.000000e-01 : f32
    %180 = vector.broadcast %cst_117 : f32 to vector<1x1xf32>
    %181 = arith.mulf %180, %179 : vector<1x1xf32>
    %182 = arith.subf %174, %181 : vector<1x1xf32>
    %183 = vector.broadcast %182 : vector<1x1xf32> to vector<1x16xf32>
    %184 = arith.subf %148, %183 : vector<1x16xf32>
    %c0_118 = arith.constant 0 : index
    %c0_119 = arith.constant 0 : index
    %185 = vector.load %arg15[%c0_118, %c0_119] : memref<4x16xf32, #tpu.memory_space<vmem>>, vector<4x16xf32>
    tpu.vector_store %arg15[%c0_118, %c0_119], %172 {strides = array<i32>} : memref<4x16xf32, #tpu.memory_space<vmem>>, vector<4x16xf32>,
    %c0_120 = arith.constant 0 : index
    %c0_121 = arith.constant 0 : index
    %186 = vector.load %arg16[%c0_120, %c0_121] : memref<1x16xf32, #tpu.memory_space<vmem>>, vector<1x16xf32>
    tpu.vector_store %arg16[%c0_120, %c0_121], %184 {strides = array<i32>} : memref<1x16xf32, #tpu.memory_space<vmem>>, vector<1x16xf32>,
    return
  }
}

</mosaic_0001>

<bundles_post_ra>
// kernel: dnf_forward.1
= control target key start
LH: loop header
LB: loop body
LE: loop exit
PB: predicated region body
PF: predicated region fallthrough
CT: control target
= control target key end

     0   :  { %v1194_v0 = vmov 0   ;;  %vm173_vm0 = vcmask 1046528   ;;  %vm148_vm1 = vcmask 56320   ;;  %vm103_vm2 = vcmask 1043456   ;;  %s1668_s2 = inlined_call_operand.vmem [shape: f32[2,4,1], index: 2, kind: input, shape index: {}]   ;;  %s1669_s5 = inlined_call_operand.vmem [shape: f32[2,64,1], index: 5, kind: input, shape index: {}]   ;;  %s1670_s7 = inlined_call_operand.vmem [shape: f32[2,1,64,1], index: 7, kind: input, shape index: {}]   ;;  %s1671_s11 = inlined_call_operand.vmem [shape: f32[2,4,1], index: 11, kind: input, shape index: {}]   ;;  %s1672_s12 = inlined_call_operand.vmem [shape: f32[2,4,1], index: 12, kind: input, shape index: {}]   ;;  %s1673_s14 = inlined_call_operand.vmem [shape: f32[2,4,1], index: 14, kind: input, shape index: {}]   ;;  %s1674_s1 = inlined_call_operand.vmem [shape: f32[7,16], index: 1, kind: input, shape index: {}]   ;;  %s1675_s3 = inlined_call_operand.vmem [shape: f32[2,64,7], index: 3, kind: input, shape index: {}]   ;;  %s1676_s0 = inlined_call_operand.vmem [shape: f32[4,16], index: 0, kind: input, shape index: {}, may-alias: {0,15}]   ;;  %s1677_s4 = inlined_call_operand.vmem [shape: f32[2,64,4], index: 4, kind: input, shape index: {}]   ;;  %s1678_s9 = inlined_call_operand.vmem [shape: f32[2,4,1], index: 9, kind: input, shape index: {}]   ;;  %s1679_s6 = inlined_call_operand.vmem [shape: f32[2,1,64,64], index: 6, kind: input, shape index: {}]   ;;  %s1680_s8 = inlined_call_operand.vmem [shape: f32[2,4,32], index: 8, kind: input, shape index: {}]   ;;  %s1681_s10 = inlined_call_operand.vmem [shape: f32[2,4,32], index: 10, kind: input, shape index: {}]   ;;  %s1682_s13 = inlined_call_operand.vmem [shape: f32[2,1,1], index: 13, kind: input, shape index: {}]   ;;  %s1683_s16 = inlined_call_operand.vmem [shape: f32[1,16], index: 16, kind: output, shape index: {1}]   ;;  %s1684_s15 = inlined_call_operand.vmem [shape: f32[4,16], index: 15, kind: output, shape index: {0}, may-alias: {0,15}]  }
   0x1   :  { %1686 = sst [smem:[#allocation2_spill]] %s1668_s2  ;;  %1173 = vset.pattern.permute.xlu0 %v1194_v0  ;;  %1174 = vset.pattern.permute.xlu1 %v1194_v0  ;;  %v224_v2 = vld [vmem:[%s1669_s5 + $0x30] sm:$0xff]  ;;  %v225_v3 = vld [vmem:[%s1669_s5 + $0x38] sm:$0xff]  ;;  %v223_v4 = vld [vmem:[%s1669_s5 + $0x28] sm:$0xff]  ;;  %vm78_vm3 = vcmask 31744   ;;  %vm338_vm4 = vcmask 523264  }
   0x2   :  { %s1687_s23 = sld [smem:[#allocation2_spill]]  ;;  %258 = vperm.xlu1 %1174, %v224_v2   ;;  %1175 = vset.pattern.permute.xlu2 %v1194_v0  ;;  %v220_v5 = vld [vmem:[%s1669_s5 + $0x10] sm:$0xff]  ;;  %v219_v6 = vld [vmem:[%s1669_s5 + $0x8] sm:$0xff]  ;;  %v293_v7 = vld [vmem:[%s1670_s7 + $0x18] sm:$0xff]  ;;  %vm419_vm5 = vcmask 261120   ;;  %vm485_vm6 = vcmask 125952  }
   0x3   :  { %v292_v8 = vld [vmem:[%s1670_s7 + $0x10] sm:$0xff]  ;;  %v290_v9 = vld [vmem:[%s1670_s7] sm:$0xff]  ;;  %v297_v10 = vld [vmem:[%s1670_s7 + $0x38] sm:$0xff]  ;;  %vm1055_vm14 = vcmask 122880  }
   0x4   :  { %v295_v11 = vld [vmem:[%s1670_s7 + $0x28] sm:$0xff]  ;;  %v294_v12 = vld [vmem:[%s1670_s7 + $0x20] sm:$0xff]  ;;  %v1135_v18 = vld [vmem:[%s1669_s5 + $0x78] sm:$0xff] }
   0x5   :  { %v444_v14 = vld [vmem:[%s1671_s11] sm:$0xf]  ;;  %v1134_v20 = vld [vmem:[%s1669_s5 + $0x70] sm:$0xff]  ;;  %v61_v22 = vld [vmem:[%s1675_s3 + $0x28] sm:$0xff] }
   0x6   :  { %v522_v15 = vld [vmem:[%s1672_s12] sm:$0xf]  ;;  %v57_v24 = vld [vmem:[%s1675_s3 + $0x8] sm:$0xff]  ;;  %v62_v25 = vld [vmem:[%s1675_s3 + $0x30] sm:$0xff] }
   0x7   :  { %v530_v16 = vld [vmem:[%s1673_s14] sm:$0xf]  ;;  %v1130_v26 = vld [vmem:[%s1669_s5 + $0x50] sm:$0xff]  ;;  %v63_v28 = vld [vmem:[%s1675_s3 + $0x38] sm:$0xff] }
   0x8   :  { %v54_v1 = vld [vmem:[%s1687_s23] sm:$0xf]  ;;  %v1329_v17 = vld [vmem:[%s1687_s23 + $0x4] sm:$0xf]  ;;  %v58_v27 = vld [vmem:[%s1675_s3 + $0x10] sm:$0xff] }
   0x9   :  { %74 = vperm.xlu0 %1173, %v54_v1   ;;  %v55_v13 = vsub.f32 1.0, %v54_v1  ;;  %v53_v19 = vld [vmem:[%s1674_s1] sm:$0x7f]  ;;  %v1129_v30 = vld [vmem:[%s1669_s5 + $0x48] sm:$0xff]  ;;  %v59_v31 = vld [vmem:[%s1675_s3 + $0x18] sm:$0xff] }
   0xa   :  { %253 = vperm.xlu1 %1174, %v223_v4   ;;  %1074 = vmatpush.msk.msra.mxu1 %vm173_vm0, %v53_v19  ;;  %v56_v21 = vld [vmem:[%s1675_s3] sm:$0xff]  ;;  %v221_v34 = vld [vmem:[%s1669_s5 + $0x18] sm:$0xff]  ;;  %v69_v37 = vld [vmem:[%s1677_s4 + $0x28] sm:$0xff] }
   0xb   :  { %1170 = vmatpush.msk.msra.mxu2 %vm173_vm0, %v53_v19  ;;  %1075 = vmatmul.msk.f32.vlgmr.msra.gmra.mxu1 %vm148_vm1, %v56_v21  ;;  %v1132_v23 = vld [vmem:[%s1669_s5 + $0x60] sm:$0xff]  ;;  %v1146_v38 = vld [vmem:[%s1670_s7 + $0x50] sm:$0xff]  ;;  %v65_v41 = vld [vmem:[%s1677_s4 + $0x8] sm:$0xff] }
   0xc   :  { %1080 = vmatmul.msk.f32.vlgmr.msra.gmra.mxu2 %vm148_vm1, %v61_v22  ;;  %v222_v29 = vld [vmem:[%s1669_s5 + $0x20] sm:$0xff]  ;;  %v70_v42 = vld [vmem:[%s1677_s4 + $0x30] sm:$0xff]  ;;  %v1151_v43 = vld [vmem:[%s1670_s7 + $0x78] sm:$0xff] }
   0xd   :  { %248 = vperm.xlu2 %1175, %v222_v29   ;;  %v1386_v32 = vld [vmem:[%s1676_s0] sm:$0xf]  ;;  %v291_v44 = vld [vmem:[%s1670_s7 + $0x8] sm:$0xff]  ;;  %v66_v45 = vld [vmem:[%s1677_s4 + $0x10] sm:$0xff] }
   0xe   :  { %v64_v36 = vld [vmem:[%s1677_s4] sm:$0xff]  ;;  %v71_v46 = vld [vmem:[%s1677_s4 + $0x38] sm:$0xff]  ;;  %v296_v48 = vld [vmem:[%s1670_s7 + $0x30] sm:$0xff] }
   0xf   :  { %v60_v39 = vld [vmem:[%s1675_s3 + $0x20] sm:$0xff]  ;;  %v67_v49 = vld [vmem:[%s1677_s4 + $0x18] sm:$0xff] }
  0x10   :  { %v218_v40 = vld [vmem:[%s1669_s5] sm:$0xff] }
  0x11   :  { %263 = vperm.xlu0 %1173, %v225_v3   ;;  %v1148_v47 = vld [vmem:[%s1670_s7 + $0x60] sm:$0xff] }
  0x12   :  { %233 = vperm.xlu1 %1174, %v219_v6   ;;  %v1164_v50 = vld [vmem:[%s1671_s11 + $0x4] sm:$0xf]  ;;  %v413_v51 = vld [vmem:[%s1678_s9] sm:$0xf] }
  0x13   :  { %1076 = vmatmul.msk.f32.gmra.mxu1 %vm148_vm1, %v57_v24  ;;  %v68_v52 = vld [vmem:[%s1677_s4 + $0x20] sm:$0xff] }
  0x14   :  { %1081 = vmatmul.msk.f32.gmra.mxu2 %vm148_vm1, %v62_v25 }
  0x15   :  { %243 = vperm.xlu2 %1175, %v221_v34  }
  0x19   :  { %238 = vperm.xlu0 %1173, %v220_v5  }
  0x1a   :  { %310 = vperm.xlu1 %1174, %v292_v8  }
  0x1b   :  { %1077 = vmatmul.msk.f32.gmra.mxu1 %vm148_vm1, %v58_v27 }
  0x1c   :  { %1082 = vmatmul.msk.f32.gmra.mxu2 %vm148_vm1, %v63_v28 }
  0x1d   :  { %228 = vperm.xlu2 %1175, %v218_v40   ;;  %v283_v40 = vld [vmem:[%s1679_s6 + $0x8] sm:$0xff] }
  0x21   :  { %315 = vperm.xlu0 %1173, %v293_v7  }
  0x22   :  { %335 = vperm.xlu1 %1174, %v297_v10  }
  0x23   :  { %1078 = vmatmul.msk.f32.gmra.mxu1 %vm148_vm1, %v59_v31 }
  0x25   :  { %305 = vperm.xlu2 %1175, %v291_v44   ;;  %v287_v44 = vld [vmem:[%s1679_s6 + $0x28] sm:$0xff] }
  0x29   :  { %300 = vperm.xlu0 %1173, %v290_v9  }
  0x2a   :  { %320 = vperm.xlu1 %1174, %v294_v12  }
  0x2b   :  { %1079 = vmatmul.msk.f32.gmra.mxu1 %vm148_vm1, %v60_v39  ;;  %v282_v39 = vld [vmem:[%s1679_s6] sm:$0xff] }
  0x2d   :  { %330 = vperm.xlu2 %1175, %v296_v48  }
  0x31   :  { %325 = vperm.xlu0 %1173, %v295_v11  }
  0x32   :  { %447 = vperm.xlu1 %1174, %v444_v14  }
  0x35   :  { %416 = vperm.xlu2 %1175, %v413_v51  }
  0x39   :  { %475 = vperm.xlu0 %1173, %v55_v13  }
  0x3a   :  { %526 = vperm.xlu1 %1174, %v522_v15  }
  0x42   :  { %533 = vperm.xlu1 %1174, %v530_v16  }
  0x4a   :  { %579 = vperm.xlu1 %1174, %v1329_v17  }
  0x52   :  { %762 = vperm.xlu1 %1174, %v1135_v18  }
  0x5a   :  { %757 = vperm.xlu1 %1174, %v1134_v20  }
  0x62   :  { %747 = vperm.xlu1 %1174, %v1132_v23  }
  0x67   :  { %v249_v0 = vpop.permute.xlu2 %248 }
  0x6a   :  { %737 = vperm.xlu1 %1174, %v1130_v26  }
  0x6f   :  { %v244_v14 = vpop.permute.xlu2 %243 }
  0x72   :  { %732 = vperm.xlu1 %1174, %v1129_v30  }
  0x74   :  { %v259_v62 = vpop.permute.xlu1 %258 }
  0x77   :  { %v229_v31 = vpop.permute.xlu2 %228 }
  0x7a   :  { %811 = vperm.xlu1 %1174, %v1146_v38  }
  0x7b   :  { %v75_v33 = vpop.permute.xlu0 %74 }
  0x7c   :  { %v77_v35 = vmul.f32 %v75_v33, %v1386_v32  ;;  %v254_v11 = vpop.permute.xlu1 %253 }
  0x7e   :  { %1065 = vmatpush.msk.msra.mxu0 %vm103_vm2, %v77_v35  ;;  %1169 = vmatpush.msk.msra.mxu3 %vm103_vm2, %v77_v35 }
  0x7f   :  { %1066 = vmatmul.msk.f32.vlgmr.msra.gmra.mxu0 %vm78_vm3, %v64_v36  ;;  %1071 = vmatmul.msk.f32.vlgmr.msra.gmra.mxu3 %vm78_vm3, %v69_v37 }
  0x80   :  { %1119 = vmatpush.msk.msrb.mxu0 %vm173_vm0, %v53_v19 }
  0x82   :  { %836 = vperm.xlu1 %1174, %v1151_v43   ;;  %v286_v43 = vld [vmem:[%s1679_s6 + $0x20] sm:$0xff] }
  0x83   :  { %v264_v7 = vpop.permute.xlu0 %263 }
  0x84   :  { %v234_v30 = vpop.permute.xlu1 %233 }
  0x87   :  { %1067 = vmatmul.msk.f32.gmra.mxu0 %vm78_vm3, %v65_v41  ;;  %1072 = vmatmul.msk.f32.gmra.mxu3 %vm78_vm3, %v70_v42  ;;  %v284_v41 = vld [vmem:[%s1679_s6 + $0x10] sm:$0xff]  ;;  %v285_v42 = vld [vmem:[%s1679_s6 + $0x18] sm:$0xff] }
  0x88   :  { %v194_v53 = vpop.f32.mrf.mxu1 }
  0x8a   :  { %821 = vperm.xlu1 %1174, %v1148_v47  }
  0x8b   :  { %v239_v26 = vpop.permute.xlu0 %238 }
  0x8c   :  { %v311_v51 = vpop.permute.xlu1 %310 }
  0x8f   :  { %1068 = vmatmul.msk.f32.gmra.mxu0 %vm78_vm3, %v66_v45  ;;  %1073 = vmatmul.msk.f32.gmra.mxu3 %vm78_vm3, %v71_v46  ;;  %v209_v54 = vpop.f32.mrf.mxu2  ;;  %v288_v45 = vld [vmem:[%s1679_s6 + $0x30] sm:$0xff]  ;;  %v289_v46 = vld [vmem:[%s1679_s6 + $0x38] sm:$0xff] }
  0x90   :  { %v197_v56 = vpop.f32.mrf.mxu1 }
  0x92   :  { %950 = vperm.xlu1 %1174, %v1164_v50  }
  0x93   :  { %v316_v50 = vpop.permute.xlu0 %315 }
  0x97   :  { %1069 = vmatmul.msk.f32.gmra.mxu0 %vm78_vm3, %v67_v49  ;;  %v212_v59 = vpop.f32.mrf.mxu2 }
  0x98   :  { %v200_v60 = vpop.f32.mrf.mxu1 }
  0x9f   :  { %1070 = vmatmul.msk.f32.gmra.mxu0 %vm78_vm3, %v68_v52  ;;  %v215_v1 = vpop.f32.mrf.mxu2 }
  0xa0   :  { %v203_v2 = vpop.f32.mrf.mxu1 }
  0xa8   :  { %v206_v16 = vpop.f32.mrf.mxu1 }
  0xfc   :  { %v124_v55 = vpop.f32.mrf.mxu0 }
  0xfd   :  { %v195_v27 = vadd.f32 %v194_v53, %v124_v55  ;;  %v306_v55 = vpop.permute.xlu2 %305 }
  0xff   :  { %v266_v35 = vadd.f32 %v229_v31, %v195_v27 }
 0x101   :  { %v274_v38 = vmax.f32 %v266_v35, 0.0  ;;  %v1128_v35 = vld [vmem:[%s1669_s5 + $0x40] sm:$0xff] }
 0x102   :  { %v139_v57 = vpop.f32.mrf.mxu3 }
 0x103   :  { %v210_v5 = vadd.f32 %v209_v54, %v139_v57 }
 0x104   :  { %v127_v58 = vpop.f32.mrf.mxu0 }
 0x105   :  { %v271_v13 = vadd.f32 %v254_v11, %v210_v5  ;;  %v198_v23 = vadd.f32 %v197_v56, %v127_v58  ;;  %v301_v58 = vpop.permute.xlu0 %300 }
 0x107   :  { %v279_v19 = vmax.f32 %v271_v13, 0.0  ;;  %v267_v34 = vadd.f32 %v234_v30, %v198_v23 }
 0x109   :  { %v275_v37 = vmax.f32 %v267_v34, 0.0  ;;  %v1133_v34 = vld [vmem:[%s1669_s5 + $0x68] sm:$0xff] }
 0x10a   :  { %v142_v61 = vpop.f32.mrf.mxu3 }
 0x10b   :  { %v213_v3 = vadd.f32 %v212_v59, %v142_v61 }
 0x10c   :  { %v130_v63 = vpop.f32.mrf.mxu0 }
 0x10d   :  { %v272_v10 = vadd.f32 %v259_v62, %v213_v3  ;;  %v201_v21 = vadd.f32 %v200_v60, %v130_v63  ;;  %v336_v3 = vpop.permute.xlu1 %335 }
 0x10f   :  { %v280_v15 = vmax.f32 %v272_v10, 0.0  ;;  %v268_v29 = vadd.f32 %v239_v26, %v201_v21 }
 0x111   :  { %v276_v36 = vmax.f32 %v268_v29, 0.0 }
 0x112   :  { %v145_v4 = vpop.f32.mrf.mxu3 }
 0x113   :  { %v216_v6 = vadd.f32 %v215_v1, %v145_v4  ;;  %v331_v4 = vpop.permute.xlu2 %330 }
 0x114   :  { %v133_v8 = vpop.f32.mrf.mxu0 }
 0x115   :  { %v273_v9 = vadd.f32 %v264_v7, %v216_v6  ;;  %v204_v18 = vadd.f32 %v203_v2, %v133_v8  ;;  %v326_v8 = vpop.permute.xlu0 %325  ;;  %v321_v11 = vpop.permute.xlu1 %320 }
 0x117   :  { %v281_v12 = vmax.f32 %v273_v9, 0.0  ;;  %v269_v25 = vadd.f32 %v244_v14, %v204_v18 }
 0x119   :  { %371 = vmatpush.msrb.mxu2 %v281_v12  ;;  %v277_v33 = vmax.f32 %v269_v25, 0.0 }
 0x11b   :  { %372 = vmatpush.msrb.mxu2 %v280_v15 }
 0x11c   :  { %v136_v20 = vpop.f32.mrf.mxu0 }
 0x11d   :  { %v207_v22 = vadd.f32 %v206_v16, %v136_v20  ;;  %373 = vmatpush.msrb.mxu2 %v279_v19  ;;  %v443_v16 = vld [vmem:[%s1681_s10] sm:$0xf]  ;;  %v417_v19 = vpop.permute.xlu2 %416  ;;  %v448_v26 = vpop.permute.xlu1 %447 }
 0x11f   :  { %v270_v24 = vadd.f32 %v249_v0, %v207_v22  ;;  %v412_v0 = vld [vmem:[%s1680_s8] sm:$0xf]  ;;  %v476_v22 = vpop.permute.xlu0 %475 }
 0x121   :  { %v278_v28 = vmax.f32 %v270_v24, 0.0 }
 0x123   :  { %374 = vmatpush.msrb.mxu2 %v278_v28 }
 0x125   :  { %375 = vmatpush.msrb.mxu2 %v277_v33 }
 0x127   :  { %376 = vmatpush.msrb.mxu2 %v276_v36  ;;  %v1145_v36 = vld [vmem:[%s1670_s7 + $0x48] sm:$0xff] }
 0x129   :  { %377 = vmatpush.msrb.mxu2 %v275_v37  ;;  %v1161_v37 = vld [vmem:[%s1678_s9 + $0x4] sm:$0xf] }
 0x12b   :  { %378 = vmatpush.msrb.mxu2 %v274_v38  ;;  %v1195_v38 = vmov 16.0  }
 0x12c   :  { %1083 = vmatmul.msk.f32.vlgmr.msrb.gmra.mxu2 %vm338_vm4, %v282_v39 }
 0x134   :  { %1084 = vmatmul.msk.f32.gmra.mxu2 %vm338_vm4, %v283_v40 }
 0x13c   :  { %1085 = vmatmul.msk.f32.gmra.mxu2 %vm338_vm4, %v284_v41 }
 0x144   :  { %1086 = vmatmul.msk.f32.gmra.mxu2 %vm338_vm4, %v285_v42 }
 0x14c   :  { %1087 = vmatmul.msk.f32.gmra.mxu2 %vm338_vm4, %v286_v43 }
 0x154   :  { %1088 = vmatmul.msk.f32.gmra.mxu2 %vm338_vm4, %v287_v44 }
 0x15c   :  { %1089 = vmatmul.msk.f32.gmra.mxu2 %vm338_vm4, %v288_v45 }
 0x164   :  { %1090 = vmatmul.msk.f32.gmra.mxu2 %vm338_vm4, %v289_v46 }
 0x1af   :  { %v380_v47 = vpop.f32.mrf.mxu2 }
 0x1b0   :  { %v381_v59 = vadd.f32 %v380_v47, %v301_v58  ;;  %v1094_v58 = vld [vmem:[%s1675_s3 + $0x40] sm:$0xff] }
 0x1b1   :  { %1120 = vmatmul.msk.f32.vlgmr.msrb.gmra.mxu0 %vm148_vm1, %v1094_v58 }
 0x1b2   :  { %v404_v63 = vmax.f32 %v381_v59, 0.0  ;;  %v527_v59 = vpop.permute.xlu1 %526 }
 0x1b7   :  { %v383_v48 = vpop.f32.mrf.mxu2 }
 0x1b8   :  { %v384_v56 = vadd.f32 %v383_v48, %v306_v55 }
 0x1ba   :  { %v405_v61 = vmax.f32 %v384_v56, 0.0 }
 0x1bf   :  { %v386_v49 = vpop.f32.mrf.mxu2 }
 0x1c0   :  { %v387_v53 = vadd.f32 %v386_v49, %v311_v51  ;;  %v1147_v51 = vld [vmem:[%s1670_s7 + $0x58] sm:$0xff] }
 0x1c2   :  { %v406_v60 = vmax.f32 %v387_v53, 0.0  ;;  %v1149_v53 = vld [vmem:[%s1670_s7 + $0x68] sm:$0xff] }
 0x1c7   :  { %v389_v52 = vpop.f32.mrf.mxu2 }
 0x1c8   :  { %v390_v54 = vadd.f32 %v389_v52, %v316_v50  ;;  %v1131_v50 = vld [vmem:[%s1669_s5 + $0x58] sm:$0xff]  ;;  %v1144_v52 = vld [vmem:[%s1670_s7 + $0x40] sm:$0xff] }
 0x1ca   :  { %v407_v57 = vmax.f32 %v390_v54, 0.0  ;;  %v558_v54 = vsub.f32 1.0, %v1329_v17 }
 0x1cc   :  { %435 = vmatpush.msrb.mxu3 %v407_v57 }
 0x1ce   :  { %436 = vmatpush.msrb.mxu3 %v406_v60 }
 0x1cf   :  { %v392_v62 = vpop.f32.mrf.mxu2 }
 0x1d0   :  { %437 = vmatpush.msrb.mxu3 %v405_v61  ;;  %v393_v12 = vadd.f32 %v392_v62, %v321_v11  ;;  %v1095_v61 = vld [vmem:[%s1675_s3 + $0x48] sm:$0xff] }
 0x1d1   :  { %1121 = vmatmul.msk.f32.gmra.mxu0 %vm148_vm1, %v1095_v61 }
 0x1d2   :  { %438 = vmatpush.msrb.mxu3 %v404_v63  ;;  %v408_v15 = vmax.f32 %v393_v12, 0.0 }
 0x1d3   :  { %1091 = vmatmul.msk.f32.vlgmr.msrb.gmra.mxu3 %vm419_vm5, %v412_v0 }
 0x1d7   :  { %v395_v1 = vpop.f32.mrf.mxu2 }
 0x1d8   :  { %v396_v9 = vadd.f32 %v395_v1, %v326_v8 }
 0x1da   :  { %v409_v14 = vmax.f32 %v396_v9, 0.0 }
 0x1df   :  { %v398_v2 = vpop.f32.mrf.mxu2 }
 0x1e0   :  { %v399_v6 = vadd.f32 %v398_v2, %v331_v4  ;;  %v534_v4 = vpop.permute.xlu1 %533 }
 0x1e2   :  { %v410_v13 = vmax.f32 %v399_v6, 0.0 }
 0x1e7   :  { %v401_v5 = vpop.f32.mrf.mxu2 }
 0x1e8   :  { %v402_v7 = vadd.f32 %v401_v5, %v336_v3 }
 0x1ea   :  { %v411_v10 = vmax.f32 %v402_v7, 0.0  ;;  %v1096_v7 = vld [vmem:[%s1675_s3 + $0x50] sm:$0xff] }
 0x1eb   :  { %1122 = vmatmul.msk.f32.gmra.mxu0 %vm148_vm1, %v1096_v7 }
 0x1ec   :  { %465 = vmatpush.msra.mxu3 %v411_v10 }
 0x1ee   :  { %466 = vmatpush.msra.mxu3 %v410_v13 }
 0x1f0   :  { %467 = vmatpush.msra.mxu3 %v409_v14 }
 0x1f2   :  { %468 = vmatpush.msra.mxu3 %v408_v15  ;;  %v1097_v15 = vld [vmem:[%s1675_s3 + $0x58] sm:$0xff] }
 0x1f3   :  { %1092 = vmatmul.msk.f32.vlgmr.msra.gmra.mxu3 %vm419_vm5, %v443_v16  ;;  %1123 = vmatmul.msk.f32.gmra.mxu0 %vm148_vm1, %v1097_v15 }
 0x256   :  { %v440_v18 = vpop.f32.mrf.mxu3 }
 0x257   :  { %v441_v20 = vadd.f32 %v440_v18, %v417_v19  ;;  %v537_v18 = vld [vmem:[%s1682_s13] sm:$0x1] }
 0x259   :  { %1176 = vtanh.f32 %v441_v20  ;;  %v580_v20 = vpop.permute.xlu1 %579 }
 0x25f   :  { %v1177_v21 = vpop.eup %1176 }
 0x260   :  { %v1495_v23 = vmul.f32 %v1177_v21, %v476_v22 }
 0x262   :  { %v481_v24 = vmul.f32 1.442695, %v1495_v23 }
 0x264   :  { %1178 = vpow2.f32 %v481_v24  ;;  %v1102_v24 = vld [vmem:[%s1677_s4 + $0x40] sm:$0xff] }
 0x265   :  { %1180 = vrcp.f32 %v1195_v38  ;;  %v692_v38 = vpop.f32.mrf.mxu0 }
 0x26a   :  { %v1179_v25 = vpop.eup %1178 }
 0x26b   :  { %v483_v30 = vmul.f32 %v1179_v25, %v1386_v32  ;;  %v1150_v32 = vld [vmem:[%s1670_s7 + $0x70] sm:$0xff]  ;;  %v1181_v39 = vpop.eup %1180 }
 0x26c   :  { %v498_v40 = vmul.f32 16.0, %v1181_v39  ;;  %vm502_vm7 = vweird.f32 %v1181_v39 }
 0x26e   :  { %v499_v41 = vsub.f32 1.0, %v498_v40 }
 0x270   :  { %v500_v42 = vmul.f32 %v1181_v39, %v499_v41 }
 0x272   :  { %v501_v43 = vadd.f32 %v1181_v39, %v500_v42 }
 0x274   :  { %v1515_v44 = vsel %vm502_vm7, %v1181_v39, %v501_v43  ;;  %v695_v39 = vpop.f32.mrf.mxu0 }
 0x276   :  { %v470_v27 = vpop.f32.mrf.mxu3 }
 0x277   :  { %v471_v28 = vadd.f32 %v470_v27, %v448_v26  ;;  %v1098_v26 = vld [vmem:[%s1675_s3 + $0x60] sm:$0xff] }
 0x278   :  { %1124 = vmatmul.msk.f32.gmra.mxu0 %vm148_vm1, %v1098_v26  ;;  %v1166_v27 = vld [vmem:[%s1672_s12 + $0x4] sm:$0xf]  ;;  %v1137_v26 = vld [vmem:[%s1679_s6 + $0x48] sm:$0xff] }
 0x279   :  { %v478_v29 = vmul.f32 %v476_v22, %v471_v28  ;;  %v1103_v28 = vld [vmem:[%s1677_s4 + $0x48] sm:$0xff] }
 0x27b   :  { %v484_v31 = vadd.f32 %v483_v30, %v478_v29  ;;  %v1099_v29 = vld [vmem:[%s1675_s3 + $0x68] sm:$0xff]  ;;  %v1104_v30 = vld [vmem:[%s1677_s4 + $0x50] sm:$0xff] }
 0x27c   :  { %v698_v42 = vpop.f32.mrf.mxu0 }
 0x27d   :  { %v494_v33 = vsel %vm485_vm6, %v484_v31, 0.0 }
 0x27e   :  { %495 = vadd.xlane.f32.xlu2 %v494_v33  ;;  %v1105_v33 = vld [vmem:[%s1677_s4 + $0x58] sm:$0xff] }
 0x280   :  { %1125 = vmatmul.msk.f32.gmra.mxu0 %vm148_vm1, %v1099_v29  ;;  %v1140_v29 = vld [vmem:[%s1679_s6 + $0x60] sm:$0xff] }
 0x296   :  { %752 = vperm.xlu2 %1175, %v1133_v34   ;;  %v1101_v34 = vld [vmem:[%s1675_s3 + $0x78] sm:$0xff] }
 0x29e   :  { %727 = vperm.xlu2 %1175, %v1128_v35   ;;  %v1106_v35 = vld [vmem:[%s1677_s4 + $0x60] sm:$0xff] }
 0x2a6   :  { %806 = vperm.xlu2 %1175, %v1145_v36   ;;  %v1107_v36 = vld [vmem:[%s1677_s4 + $0x68] sm:$0xff] }
 0x2ae   :  { %831 = vperm.xlu2 %1175, %v1150_v32   ;;  %v1108_v32 = vld [vmem:[%s1677_s4 + $0x70] sm:$0xff] }
 0x2b6   :  { %918 = vperm.xlu2 %1175, %v1161_v37   ;;  %v1109_v37 = vld [vmem:[%s1677_s4 + $0x78] sm:$0xff] }
 0x2f1   :  { %v496_v45 = vpop.xlane.xlu2 %495 }
 0x2f2   :  { %v504_v46 = vmul.f32 %v1515_v44, %v496_v45  ;;  %v701_v45 = vpop.f32.mrf.mxu0 }
 0x2f4   :  { %v505_v47 = vsub.f32 %v484_v31, %v504_v46  ;;  %v1100_v31 = vld [vmem:[%s1675_s3 + $0x70] sm:$0xff] }
 0x2f5   :  { %1126 = vmatmul.msk.f32.gmra.mxu0 %vm148_vm1, %v1100_v31  ;;  %v1142_v31 = vld [vmem:[%s1679_s6 + $0x70] sm:$0xff] }
 0x2f6   :  { %v506_v48 = vmul.f32 %v505_v47, %v505_v47 }
 0x2f8   :  { %v507_v49 = vsel %vm485_vm6, %v506_v48, 0.0 }
 0x2f9   :  { %508 = vadd.xlane.f32.xlu0 %v507_v49  ;;  %v763_v49 = vpop.permute.xlu1 %762 }
 0x2fa   :  { %v704_v48 = vpop.f32.mrf.mxu0 }
 0x2fd   :  { %1127 = vmatmul.msk.f32.gmra.mxu0 %vm148_vm1, %v1101_v34 }
 0x30d   :  { %742 = vperm.xlu0 %1173, %v1131_v50  }
 0x315   :  { %816 = vperm.xlu0 %1173, %v1147_v51   ;;  %v707_v51 = vpop.f32.mrf.mxu0 }
 0x31d   :  { %801 = vperm.xlu0 %1173, %v1144_v52   ;;  %v758_v52 = vpop.permute.xlu1 %757 }
 0x325   :  { %826 = vperm.xlu0 %1173, %v1149_v53  }
 0x32d   :  { %978 = vperm.xlu0 %1173, %v558_v54  }
 0x36c   :  { %v509_v55 = vpop.xlane.xlu0 %508 }
 0x36d   :  { %v510_v56 = vmul.f32 0.06666667, %v509_v55  ;;  %v748_v55 = vpop.permute.xlu1 %747 }
 0x36f   :  { %v511_v57 = vadd.f32 1e-05, %v510_v56 }
 0x371   :  { %1182 = vrsqrt.f32 %v511_v57  ;;  %vm518_vm9 = vweird.f32 %v511_v57 }
 0x372   :  { %1184 = vlog2.f32 %v511_v57  ;;  %v710_v54 = vpop.f32.mrf.mxu0 }
 0x377   :  { %v1183_v60 = vpop.eup %1182 }
 0x378   :  { %v1185_v62 = vpop.eup %1184  ;;  %v513_v17 = vmul.f32 %v1183_v60, %v511_v57  ;;  %vm519_vm8 = vweird.f32 %v1183_v60 }
 0x379   :  { %v539_v63 = vmul.f32 0.6931472, %v1185_v62  ;;  %vm520_vm10 = vmor %vm518_vm9, %vm519_vm8  ;;  %v738_v62 = vpop.permute.xlu1 %737 }
 0x37a   :  { %v514_v0 = vmul.f32 %v1183_v60, %v513_v17  ;;  %v713_v57 = vpop.f32.mrf.mxu0 }
 0x37b   :  { %v540_v1 = vsel %vm103_vm2, %v539_v63, 0.0 }
 0x37c   :  { %v515_v2 = vmul.f32 0.5, %v514_v0  ;;  %v541_v3 = vrot.slane %v540_v1, 4 }
 0x37e   :  { %v516_v5 = vsub.f32 1.5, %v515_v2  ;;  %v542_v6 = vadd.f32 %v541_v3, %v540_v1  ;;  %v753_v1 = vpop.permute.xlu2 %752 }
 0x380   :  { %v517_v8 = vmul.f32 %v1183_v60, %v516_v5  ;;  %v543_v9 = vrot.slane %v542_v6, 2 }
 0x382   :  { %v521_v10 = vsel %vm520_vm10, %v1183_v60, %v517_v8  ;;  %v544_v11 = vadd.f32 %v543_v9, %v542_v6  ;;  %v743_v8 = vpop.permute.xlu0 %742 }
 0x383   :  { %v523_v12 = vmul.f32 %v521_v10, %v505_v47 }
 0x384   :  { %v545_v13 = vrot.slane %v544_v11, 1 }
 0x385   :  { %v529_v14 = vmul.f32 %v527_v59, %v523_v12 }
 0x386   :  { %v546_v16 = vadd.f32 %v545_v13, %v544_v11 }
 0x387   :  { %v1551_v19 = vadd.f32 %v534_v4, %v529_v14  ;;  %v733_v14 = vpop.permute.xlu1 %732 }
 0x388   :  { %v547_v21 = vmul.f32 0.5, %v546_v16 }
 0x389   :  { %v582_v22 = vmul.f32 %v580_v20, %v1551_v19 }
 0x38a   :  { %v548_v25 = vsub.f32 %v537_v18, %v547_v21  ;;  %v728_v18 = vpop.permute.xlu2 %727 }
 0x38b   :  { %1110 = vmatpush.msk.msrb.mxu3 %vm103_vm2, %v582_v22 }
 0x38c   :  { %551 = vperm.xlu1 %1174, %v548_v25   ;;  %1111 = vmatmul.msk.f32.vlgmr.msrb.gmra.mxu3 %vm78_vm3, %v1102_v24  ;;  %v1136_v25 = vld [vmem:[%s1679_s6 + $0x40] sm:$0xff] }
 0x394   :  { %1022 = vperm.xlu1 %1174, %v1166_v27   ;;  %1112 = vmatmul.msk.f32.gmra.mxu3 %vm78_vm3, %v1103_v28  ;;  %v1138_v27 = vld [vmem:[%s1679_s6 + $0x50] sm:$0xff]  ;;  %v1139_v28 = vld [vmem:[%s1679_s6 + $0x58] sm:$0xff] }
 0x39c   :  { %1113 = vmatmul.msk.f32.gmra.mxu3 %vm78_vm3, %v1104_v30  ;;  %v1141_v30 = vld [vmem:[%s1679_s6 + $0x68] sm:$0xff] }
 0x3a4   :  { %1114 = vmatmul.msk.f32.gmra.mxu3 %vm78_vm3, %v1105_v33  ;;  %v1143_v33 = vld [vmem:[%s1679_s6 + $0x78] sm:$0xff] }
 0x3ac   :  { %1115 = vmatmul.msk.f32.gmra.mxu3 %vm78_vm3, %v1106_v35 }
 0x3b4   :  { %1116 = vmatmul.msk.f32.gmra.mxu3 %vm78_vm3, %v1107_v36 }
 0x3bc   :  { %1117 = vmatmul.msk.f32.gmra.mxu3 %vm78_vm3, %v1108_v32  ;;  %v817_v32 = vpop.permute.xlu0 %816 }
 0x3c4   :  { %1118 = vmatmul.msk.f32.gmra.mxu3 %vm78_vm3, %v1109_v37  ;;  %v812_v37 = vpop.permute.xlu1 %811 }
 0x40f   :  { %v627_v40 = vpop.f32.mrf.mxu3 }
 0x410   :  { %v693_v41 = vadd.f32 %v692_v38, %v627_v40 }
 0x412   :  { %v765_v21 = vadd.f32 %v728_v18, %v693_v41  ;;  %v807_v41 = vpop.permute.xlu2 %806 }
 0x414   :  { %v773_v24 = vmax.f32 %v765_v21, 0.0 }
 0x417   :  { %v630_v43 = vpop.f32.mrf.mxu3 }
 0x418   :  { %v696_v9 = vadd.f32 %v695_v39, %v630_v43 }
 0x41a   :  { %v766_v16 = vadd.f32 %v733_v14, %v696_v9 }
 0x41c   :  { %v774_v22 = vmax.f32 %v766_v16, 0.0 }
 0x41f   :  { %v633_v46 = vpop.f32.mrf.mxu3 }
 0x420   :  { %v699_v5 = vadd.f32 %v698_v42, %v633_v46 }
 0x422   :  { %v767_v13 = vadd.f32 %v738_v62, %v699_v5 }
 0x424   :  { %v775_v20 = vmax.f32 %v767_v13, 0.0 }
 0x427   :  { %v636_v47 = vpop.f32.mrf.mxu3 }
 0x428   :  { %v702_v2 = vadd.f32 %v701_v45, %v636_v47  ;;  %v802_v45 = vpop.permute.xlu0 %801 }
 0x42a   :  { %v768_v11 = vadd.f32 %v743_v8, %v702_v2  ;;  %v1163_v2 = vld [vmem:[%s1681_s10 + $0x4] sm:$0xf] }
 0x42c   :  { %v776_v15 = vmax.f32 %v768_v11, 0.0 }
 0x42f   :  { %v639_v50 = vpop.f32.mrf.mxu3 }
 0x430   :  { %v705_v17 = vadd.f32 %v704_v48, %v639_v50  ;;  %v1160_v50 = vld [vmem:[%s1680_s8 + $0x4] sm:$0xf] }
 0x432   :  { %v769_v7 = vadd.f32 %v748_v55, %v705_v17  ;;  %v832_v55 = vpop.permute.xlu2 %831 }
 0x434   :  { %v777_v12 = vmax.f32 %v769_v7, 0.0 }
 0x437   :  { %v642_v53 = vpop.f32.mrf.mxu3 }
 0x438   :  { %v708_v60 = vadd.f32 %v707_v51, %v642_v53 }
 0x43a   :  { %v770_v4 = vadd.f32 %v753_v1, %v708_v60  ;;  %v919_v5 = vpop.permute.xlu2 %918 }
 0x43c   :  { %v778_v10 = vmax.f32 %v770_v4, 0.0 }
 0x43f   :  { %v645_v56 = vpop.f32.mrf.mxu3 }
 0x440   :  { %v711_v58 = vadd.f32 %v710_v54, %v645_v56  ;;  %v837_v54 = vpop.permute.xlu1 %836 }
 0x442   :  { %v771_v0 = vadd.f32 %v758_v52, %v711_v58 }
 0x444   :  { %v779_v6 = vmax.f32 %v771_v0, 0.0 }
 0x447   :  { %v648_v59 = vpop.f32.mrf.mxu3 }
 0x448   :  { %v714_v61 = vadd.f32 %v713_v57, %v648_v59  ;;  %v827_v59 = vpop.permute.xlu0 %826  ;;  %v822_v62 = vpop.permute.xlu1 %821 }
 0x44a   :  { %v772_v63 = vadd.f32 %v763_v49, %v714_v61 }
 0x44c   :  { %v780_v3 = vmax.f32 %v772_v63, 0.0 }
 0x44e   :  { %871 = vmatpush.msrb.mxu1 %v780_v3  ;;  %v486_v3 = vsel %vm485_vm6, %v1495_v23, 0.0 }
 0x44f   :  { %v487_v4 = vrot.slane %v486_v3, 4 }
 0x450   :  { %872 = vmatpush.msrb.mxu1 %v779_v6 }
 0x451   :  { %v488_v7 = vadd.f32 %v487_v4, %v486_v3 }
 0x452   :  { %873 = vmatpush.msrb.mxu1 %v778_v10  ;;  %v951_v10 = vpop.permute.xlu1 %950 }
 0x453   :  { %v489_v9 = vrot.slane %v488_v7, 2 }
 0x454   :  { %874 = vmatpush.msrb.mxu1 %v777_v12  ;;  %v979_v12 = vpop.permute.xlu0 %978 }
 0x455   :  { %v490_v13 = vadd.f32 %v489_v9, %v488_v7 }
 0x456   :  { %875 = vmatpush.msrb.mxu1 %v776_v15 }
 0x457   :  { %v491_v16 = vrot.slane %v490_v13, 1 }
 0x458   :  { %876 = vmatpush.msrb.mxu1 %v775_v20 }
 0x45a   :  { %877 = vmatpush.msrb.mxu1 %v774_v22  ;;  %v552_v21 = vpop.permute.xlu1 %551  ;;  %v492_v22 = vadd.f32 %v491_v16, %v490_v13 }
 0x45c   :  { %878 = vmatpush.msrb.mxu1 %v773_v24  ;;  %v554_v24 = vperm.slane %v552_v21, 0 }
 0x45d   :  { %1152 = vmatmul.msk.f32.vlgmr.msrb.gmra.mxu1 %vm338_vm4, %v1136_v25 }
 0x465   :  { %1153 = vmatmul.msk.f32.gmra.mxu1 %vm338_vm4, %v1137_v26  ;;  %v493_v26 = vsub.f32 0.0, %v492_v22 }
 0x46d   :  { %1154 = vmatmul.msk.f32.gmra.mxu1 %vm338_vm4, %v1138_v27 }
 0x475   :  { %1155 = vmatmul.msk.f32.gmra.mxu1 %vm338_vm4, %v1139_v28 }
 0x47d   :  { %1156 = vmatmul.msk.f32.gmra.mxu1 %vm338_vm4, %v1140_v29  ;;  %v555_v29 = vsub.f32 %v493_v26, %v554_v24 }
 0x485   :  { %1157 = vmatmul.msk.f32.gmra.mxu1 %vm338_vm4, %v1141_v30 }
 0x48d   :  { %1158 = vmatmul.msk.f32.gmra.mxu1 %vm338_vm4, %v1142_v31 }
 0x495   :  { %1159 = vmatmul.msk.f32.gmra.mxu1 %vm338_vm4, %v1143_v33 }
 0x4da   :  { %v880_v34 = vpop.f32.mrf.mxu1 }
 0x4db   :  { %v881_v46 = vadd.f32 %v880_v34, %v802_v45 }
 0x4dd   :  { %v904_v51 = vmax.f32 %v881_v46, 0.0 }
 0x4e2   :  { %v883_v35 = vpop.f32.mrf.mxu1 }
 0x4e3   :  { %v884_v42 = vadd.f32 %v883_v35, %v807_v41 }
 0x4e5   :  { %v905_v48 = vmax.f32 %v884_v42, 0.0 }
 0x4ea   :  { %v886_v36 = vpop.f32.mrf.mxu1 }
 0x4eb   :  { %v887_v39 = vadd.f32 %v886_v36, %v812_v37 }
 0x4ed   :  { %v906_v47 = vmax.f32 %v887_v39, 0.0 }
 0x4f2   :  { %v889_v38 = vpop.f32.mrf.mxu1 }
 0x4f3   :  { %v890_v40 = vadd.f32 %v889_v38, %v817_v32 }
 0x4f5   :  { %v907_v43 = vmax.f32 %v890_v40, 0.0 }
 0x4f7   :  { %936 = vmatpush.msra.mxu2 %v907_v43 }
 0x4f9   :  { %937 = vmatpush.msra.mxu2 %v906_v47 }
 0x4fa   :  { %v892_v49 = vpop.f32.mrf.mxu1 }
 0x4fb   :  { %938 = vmatpush.msra.mxu2 %v905_v48  ;;  %v893_v17 = vadd.f32 %v892_v49, %v822_v62 }
 0x4fd   :  { %939 = vmatpush.msra.mxu2 %v904_v51  ;;  %v908_v1 = vmax.f32 %v893_v17, 0.0  ;;  %v1023_v17 = vpop.permute.xlu1 %1022 }
 0x4fe   :  { %1162 = vmatmul.msk.f32.vlgmr.msra.gmra.mxu2 %vm419_vm5, %v1160_v50 }
 0x502   :  { %v895_v52 = vpop.f32.mrf.mxu1 }
 0x503   :  { %v896_v60 = vadd.f32 %v895_v52, %v827_v59 }
 0x505   :  { %v909_v0 = vmax.f32 %v896_v60, 0.0 }
 0x50a   :  { %v898_v53 = vpop.f32.mrf.mxu1 }
 0x50b   :  { %v899_v57 = vadd.f32 %v898_v53, %v832_v55 }
 0x50d   :  { %v910_v63 = vmax.f32 %v899_v57, 0.0 }
 0x512   :  { %v901_v56 = vpop.f32.mrf.mxu1 }
 0x513   :  { %v902_v58 = vadd.f32 %v901_v56, %v837_v54 }
 0x515   :  { %v911_v61 = vmax.f32 %v902_v58, 0.0  ;;  %v1167_v58 = vld [vmem:[%s1673_s14 + $0x4] sm:$0xf] }
 0x517   :  { %968 = vmatpush.msrb.mxu2 %v911_v61 }
 0x519   :  { %969 = vmatpush.msrb.mxu2 %v910_v63 }
 0x51b   :  { %970 = vmatpush.msrb.mxu2 %v909_v0 }
 0x51d   :  { %971 = vmatpush.msrb.mxu2 %v908_v1 }
 0x51e   :  { %1165 = vmatmul.msk.f32.vlgmr.msrb.gmra.mxu2 %vm419_vm5, %v1163_v2 }
 0x581   :  { %v941_v6 = vpop.f32.mrf.mxu2 }
 0x582   :  { %v942_v8 = vadd.f32 %v941_v6, %v919_v5 }
 0x584   :  { %1186 = vtanh.f32 %v942_v8 }
 0x58a   :  { %v1187_v11 = vpop.eup %1186 }
 0x58b   :  { %v983_v14 = vmul.f32 %v1187_v11, %v979_v12 }
 0x58d   :  { %v988_v15 = vsel %vm485_vm6, %v983_v14, 0.0  ;;  %v984_v28 = vmul.f32 1.442695, %v983_v14 }
 0x58e   :  { %v989_v18 = vrot.slane %v988_v15, 4 }
 0x58f   :  { %1188 = vpow2.f32 %v984_v28 }
 0x590   :  { %v990_v20 = vadd.f32 %v989_v18, %v988_v15 }
 0x592   :  { %v991_v23 = vrot.slane %v990_v20, 2 }
 0x594   :  { %v992_v25 = vadd.f32 %v991_v23, %v990_v20 }
 0x595   :  { %v1189_v33 = vpop.eup %1188 }
 0x596   :  { %v993_v27 = vrot.slane %v992_v25, 1  ;;  %v986_v32 = vmul.f32 %v1189_v33, %v1551_v19 }
 0x598   :  { %v994_v30 = vadd.f32 %v993_v27, %v992_v25 }
 0x59a   :  { %v995_v31 = vsub.f32 %v555_v29, %v994_v30 }
 0x5a1   :  { %v973_v34 = vpop.f32.mrf.mxu2 }
 0x5a2   :  { %v974_v35 = vadd.f32 %v973_v34, %v951_v10 }
 0x5a4   :  { %v981_v36 = vmul.f32 %v979_v12, %v974_v35 }
 0x5a6   :  { %v987_v37 = vadd.f32 %v986_v32, %v981_v36 }
 0x5a8   :  { %v996_v38 = vsel %vm485_vm6, %v987_v37, 0.0 }
 0x5a9   :  { %997 = vadd.xlane.f32.xlu2 %v996_v38 }
 0x61c   :  { %v998_v39 = vpop.xlane.xlu2 %997 }
 0x61d   :  { %v999_v40 = vmul.f32 %v998_v39, %v1515_v44  ;;  %v1168_v44 = vld [vmem:[%s1682_s13 + $0x1] sm:$0x1] }
 0x61f   :  { %v1000_v41 = vsub.f32 %v987_v37, %v999_v40 }
 0x621   :  { %v1001_v42 = vmul.f32 %v1000_v41, %v1000_v41 }
 0x623   :  { %v1002_v43 = vsel %vm485_vm6, %v1001_v42, 0.0 }
 0x624   :  { %1003 = vadd.xlane.f32.xlu0 %v1002_v43 }
 0x697   :  { %v1004_v45 = vpop.xlane.xlu0 %1003 }
 0x698   :  { %v1005_v46 = vmul.f32 0.06666667, %v1004_v45 }
 0x69a   :  { %v1006_v47 = vadd.f32 1e-05, %v1005_v46 }
 0x69c   :  { %1190 = vlog2.f32 %v1006_v47  ;;  %vm1013_vm12 = vweird.f32 %v1006_v47 }
 0x69d   :  { %1192 = vrsqrt.f32 %v1006_v47 }
 0x6a2   :  { %v1191_v48 = vpop.eup %1190 }
 0x6a3   :  { %v1037_v49 = vmul.f32 0.6931472, %v1191_v48  ;;  %v1193_v59 = vpop.eup %1192 }
 0x6a4   :  { %v1008_v60 = vmul.f32 %v1193_v59, %v1006_v47  ;;  %vm1014_vm11 = vweird.f32 %v1193_v59 }
 0x6a5   :  { %v1038_v19 = vsel %vm103_vm2, %v1037_v49, 0.0  ;;  %vm1015_vm13 = vmor %vm1013_vm12, %vm1014_vm11 }
 0x6a6   :  { %v1039_v50 = vrot.slane %v1038_v19, 4  ;;  %v1009_v61 = vmul.f32 %v1193_v59, %v1008_v60 }
 0x6a8   :  { %v1040_v51 = vadd.f32 %v1039_v50, %v1038_v19  ;;  %v1010_v62 = vmul.f32 0.5, %v1009_v61 }
 0x6aa   :  { %v1041_v52 = vrot.slane %v1040_v51, 2  ;;  %v1011_v63 = vsub.f32 1.5, %v1010_v62 }
 0x6ac   :  { %v1042_v53 = vadd.f32 %v1041_v52, %v1040_v51  ;;  %v1012_v0 = vmul.f32 %v1193_v59, %v1011_v63 }
 0x6ae   :  { %v1043_v54 = vrot.slane %v1042_v53, 1  ;;  %v1016_v2 = vsel %vm1015_vm13, %v1193_v59, %v1012_v0 }
 0x6af   :  { %v1019_v5 = vmul.f32 %v1016_v2, %v1000_v41 }
 0x6b0   :  { %v1044_v55 = vadd.f32 %v1043_v54, %v1042_v53 }
 0x6b1   :  { %v1025_v6 = vmul.f32 %v1023_v17, %v1019_v5 }
 0x6b2   :  { %v1045_v56 = vmul.f32 0.5, %v1044_v55 }
 0x6b4   :  { %v1046_v57 = vsub.f32 %v1168_v44, %v1045_v56 }
 0x6b6   :  { %1049 = vperm.xlu1 %1174, %v1046_v57  }
 0x6be   :  { %1030 = vperm.xlu1 %1174, %v1167_v58  }
 0x728   :  { %v1050_v1 = vpop.permute.xlu1 %1049 }
 0x729   :  { %v1052_v3 = vperm.slane %v1050_v1, 0 }
 0x72b   :  { %v1053_v4 = vsub.f32 %v995_v31, %v1052_v3 }
 0x72d   :  { %1056 = vst.msk [vmem:[%s1683_s16] sm:$0x1] %vm1055_vm14, %v1053_v4 }
 0x730   :  { %v1031_v7 = vpop.permute.xlu1 %1030 }
 0x731   :  { %v1033_v8 = vadd.f32 %v1031_v7, %v1025_v6 }
 0x733   :  { %1054 = vst.msk [vmem:[%s1684_s15] sm:$0xf] %vm485_vm6, %v1033_v8 }

</bundles_post_ra>
